<compile_context>
chip_gen: v6e
topology: v6e:2x2x1
jax: 0.10.0
libtpu: 0.0.40
codegen_flags: <defaults>
</compile_context>

<pallas_src>
import jax
import jax.numpy as jnp
from jax.experimental import pallas as pl
from jax.experimental.pallas import tpu as pltpu

EPS = 1e-5  # PyTorch nn.LayerNorm default eps

H1 = 128   # fc1 / LayerNorm(128) width
H2 = 64    # fc2 / action_value / LayerNorm(64) width
HF = H1 + H2  # fused first-layer output width (192)


def _round_up(x, m):
    return ((x + m - 1) // m) * m


def _layernorm_fused(x, gamma, beta):
    """LayerNorm with fused mean / mean-of-squares (2 cross-lane reductions)."""
    mu = jnp.mean(x, axis=-1, keepdims=True)
    msq = jnp.mean(x * x, axis=-1, keepdims=True)
    var = msq - mu * mu
    return (x - mu) * jax.lax.rsqrt(var + EPS) * gamma + beta


def critic_kernel(x_ref, w_in_ref, p192_ref, w2_ref, p64_ref, out_ref):
    x = x_ref[...].astype(jnp.float32)

    # Fused fc1 + action_value: one matmul against the block-diagonal weight.
    h = jnp.dot(x, w_in_ref[...], preferred_element_type=jnp.float32)
    h = h + p192_ref[0:1, :]                       # fused bias [b1 || ba]

    hs = h[:, :H1]                                 # fc1(state) branch
    ha = h[:, H1:]                                 # action_value(action) branch

    # LayerNorm(128) -> relu on the state branch.
    hs = _layernorm_fused(hs, p192_ref[1:2, :H1], p192_ref[2:3, :H1])
    hs = jnp.maximum(hs, 0.0)

    # fc2 -> LayerNorm(64)   (no relu here; matches the PyTorch forward)
    h2 = jnp.dot(hs, w2_ref[...], preferred_element_type=jnp.float32)
    h2 = h2 + p64_ref[0:1, :]                      # b2
    h2 = _layernorm_fused(h2, p64_ref[1:2, :], p64_ref[2:3, :])

    # Action branch relu, fuse branches, relu.
    ha = jnp.maximum(ha, 0.0)
    sa = jnp.maximum(h2 + ha, 0.0)

    # q head: VPU mul + XLU reduce instead of an N=1 MXU matmul.
    q = jnp.sum(sa * p64_ref[3:4, :], axis=-1, keepdims=True) + p64_ref[4:5, 0:1]
    out_ref[...] = q.astype(out_ref.dtype)


def _pack_params(params, state_dim, action_dim):
    """Pack per-layer params into a few dense VMEM tiles."""
    # Block-diagonal first-layer weight [S+A, 192].
    w_in = jnp.zeros((state_dim + action_dim, HF), jnp.float32)
    w_in = w_in.at[:state_dim, :H1].set(params["w1"])
    w_in = w_in.at[state_dim:, H1:].set(params["wa"])

    # [3, 192]: row0 = [b1 || ba], row1 = [g1 | pad], row2 = [be1 | pad]
    b_in = jnp.concatenate([params["b1"], params["ba"]], axis=1)
    g1p = jnp.pad(params["g1"], ((0, 0), (0, H2)))
    be1p = jnp.pad(params["be1"], ((0, 0), (0, H2)))
    p192 = jnp.concatenate([b_in, g1p, be1p], axis=0)

    # [5, 64]: rows = b2, g2, be2, wq (as a row), bq (broadcast)
    wq_row = params["wq"].T                                  # [1, 64]
    bq_row = jnp.full((1, H2), params["bq"][0, 0], jnp.float32)
    p64 = jnp.concatenate(
        [params["b2"], params["g2"], params["be2"], wq_row, bq_row], axis=0)

    return w_in, p192, params["w2"].astype(jnp.float32), p64


def critic_forward(state, action, params, *, max_tile=512):
    B, S = state.shape
    A = action.shape[1]

    # Concatenate state||action -> single input DMA stream.
    x = jnp.concatenate([state.astype(jnp.float32),
                         action.astype(jnp.float32)], axis=1)

    # Batch tile: multiple of 8 sublanes, capped so it always fits 64 MiB VMEM
    # (v7x) with plenty of headroom (activations per step ~ TB*704*4B ≈ 1.4 MiB
    # at TB=512).
    TB = min(max_tile, _round_up(B, 8))
    Bp = _round_up(B, TB)
    if Bp != B:
        x = jnp.pad(x, ((0, Bp - B), (0, 0)))     # zero rows: LN stays finite

    w_in, p192, w2, p64 = _pack_params(params, S, A)

    grid = (Bp // TB,)
    out = pl.pallas_call(
        critic_kernel,
        out_shape=jax.ShapeDtypeStruct((Bp, 1), jnp.float32),
        grid=grid,
        in_specs=[
            pl.BlockSpec((TB, S + A), lambda i: (i, 0)),     # batch-tiled input
            pl.BlockSpec((S + A, HF), lambda i: (0, 0)),     # resident weights
            pl.BlockSpec((3, HF), lambda i: (0, 0)),
            pl.BlockSpec((H1, H2), lambda i: (0, 0)),
            pl.BlockSpec((5, H2), lambda i: (0, 0)),
        ],
        out_specs=pl.BlockSpec((TB, 1), lambda i: (i, 0)),
        compiler_params=pltpu.CompilerParams(
            dimension_semantics=("parallel",)),              # 2 TCs on v7x
    )(x, w_in, p192, w2, p64)

    return out[:B]


def init_params(key, state_dim, action_dim):
    """Deterministic init mimicking Critic.initialization() (uniform ranges)."""
    ks = jax.random.split(key, 8)

    def unif(k, shape, bound):
        return jax.random.uniform(k, shape, jnp.float32, -bound, bound)

    f1 = 1.0 / jnp.sqrt(jnp.float32(state_dim))
    f2 = 1.0 / jnp.sqrt(jnp.float32(H1))
    fa = 1.0 / jnp.sqrt(jnp.float32(action_dim))
    f3 = 0.003
    return {
        # fc1: state_dim -> 128
        "w1": unif(ks[0], (state_dim, H1), f1),
        "b1": unif(ks[1], (1, H1), f1),
        "g1": jnp.ones((1, H1), jnp.float32),
        "be1": jnp.zeros((1, H1), jnp.float32),
        # fc2: 128 -> 64
        "w2": unif(ks[2], (H1, H2), f2),
        "b2": unif(ks[3], (1, H2), f2),
        "g2": jnp.ones((1, H2), jnp.float32),
        "be2": jnp.zeros((1, H2), jnp.float32),
        # action_value: action_dim -> 64
        "wa": unif(ks[4], (action_dim, H2), fa),
        "ba": unif(ks[5], (1, H2), fa),
        # q: 64 -> 1
        "wq": unif(ks[6], (H2, 1), f3),
        "bq": unif(ks[7], (1, 1), f3),
    }


def _layernorm_ref(x, gamma, beta):
    mu = jnp.mean(x, axis=-1, keepdims=True)
    var = jnp.mean((x - mu) * (x - mu), axis=-1, keepdims=True)
    return (x - mu) * jax.lax.rsqrt(var + EPS) * gamma + beta


def critic_reference(state, action, p):
    """Pure-JAX reference of the PyTorch forward, for verification."""
    h = state @ p["w1"] + p["b1"]
    h = _layernorm_ref(h, p["g1"], p["be1"])
    h = jnp.maximum(h, 0.0)
    h = h @ p["w2"] + p["b2"]
    h = _layernorm_ref(h, p["g2"], p["be2"])
    av = jnp.maximum(action @ p["wa"] + p["ba"], 0.0)
    sa = jnp.maximum(h + av, 0.0)
    return sa @ p["wq"] + p["bq"]


if __name__ == "__main__":
    B, STATE_DIM, ACTION_DIM = 8, 8, 2

    key = jax.random.PRNGKey(0)
    k_state, k_action, k_params = jax.random.split(key, 3)

    state = jax.random.normal(k_state, (B, STATE_DIM), jnp.float32)
    action = jax.random.normal(k_action, (B, ACTION_DIM), jnp.float32)
    params = init_params(k_params, STATE_DIM, ACTION_DIM)

    q = critic_forward(state, action, params)
    q = jax.block_until_ready(q)

    q_ref = critic_reference(state, action, params)
    assert q.shape == (B, 1), q.shape
    assert jnp.allclose(q, q_ref, atol=1e-4, rtol=1e-4), (q, q_ref)

    # Also exercise a batch that is not a multiple of the tile size.
    B2 = 37
    k_s2, k_a2 = jax.random.split(jax.random.PRNGKey(1))
    state2 = jax.random.normal(k_s2, (B2, STATE_DIM), jnp.float32)
    action2 = jax.random.normal(k_a2, (B2, ACTION_DIM), jnp.float32)
    q2 = jax.block_until_ready(critic_forward(state2, action2, params))
    q2_ref = critic_reference(state2, action2, params)
    assert q2.shape == (B2, 1), q2.shape
    assert jnp.allclose(q2, q2_ref, atol=1e-4, rtol=1e-4), (q2, q2_ref)

    print("KERNEL_OK")
</pallas_src>

<mosaic_0001>
module attributes {stable_mosaic.version = 11 : i64} {
  func.func @critic_kernel(%arg0: i32, %arg1: memref<8x10xf32, #tpu.memory_space<vmem>>, %arg2: memref<10x192xf32, #tpu.memory_space<vmem>>, %arg3: memref<3x192xf32, #tpu.memory_space<vmem>>, %arg4: memref<128x64xf32, #tpu.memory_space<vmem>>, %arg5: memref<5x64xf32, #tpu.memory_space<vmem>>, %arg6: memref<8x1xf32, #tpu.memory_space<vmem>>) attributes {dimension_semantics = [#tpu.dimension_semantics<parallel>], iteration_bounds = array<i64: 1>, scalar_prefetch = 0 : i64, scratch_operands = 0 : i64, tpu.core_type = #tpu.core_type<tc>, window_params = [{transform_indices = @transform_0, window_bounds = array<i64: 8, 10>}, {pipeline_mode = #tpu.pipeline_mode<synchronous>, transform_indices = @transform_1, window_bounds = array<i64: 10, 192>}, {pipeline_mode = #tpu.pipeline_mode<synchronous>, transform_indices = @transform_2, window_bounds = array<i64: 3, 192>}, {pipeline_mode = #tpu.pipeline_mode<synchronous>, transform_indices = @transform_3, window_bounds = array<i64: 128, 64>}, {pipeline_mode = #tpu.pipeline_mode<synchronous>, transform_indices = @transform_4, window_bounds = array<i64: 5, 64>}, {transform_indices = @transform_5, window_bounds = array<i64: 8, 1>}]} {
    %c0 = arith.constant 0 : index
    %c0_0 = arith.constant 0 : index
    %0 = vector.load %arg1[%c0, %c0_0] : memref<8x10xf32, #tpu.memory_space<vmem>>, vector<8x10xf32>
    %c0_1 = arith.constant 0 : index
    %c0_2 = arith.constant 0 : index
    %1 = vector.load %arg2[%c0_1, %c0_2] : memref<10x192xf32, #tpu.memory_space<vmem>>, vector<10x192xf32>
    %cst = arith.constant dense<0.000000e+00> : vector<8x192xf32>
    %2 = tpu.matmul %0, %1, %cst {dimension_numbers = #tpu.dot_dimension_numbers<[1], [0], [0], [1], [0, 0, 1, 1], [], []>} : vector<8x10xf32>, vector<10x192xf32>, vector<8x192xf32> -> vector<8x192xf32>
    %c0_3 = arith.constant 0 : index
    %c0_4 = arith.constant 0 : index
    %3 = vector.load %arg3[%c0_3, %c0_4] : memref<3x192xf32, #tpu.memory_space<vmem>>, vector<1x192xf32>
    %4 = vector.broadcast %3 : vector<1x192xf32> to vector<8x192xf32>
    %5 = arith.addf %2, %4 : vector<8x192xf32>
    %6 = vector.extract_strided_slice %5 {offsets = [0, 0], sizes = [8, 128], strides = [1, 1]} : vector<8x192xf32> to vector<8x128xf32>
    %7 = vector.extract_strided_slice %5 {offsets = [0, 128], sizes = [8, 64], strides = [1, 1]} : vector<8x192xf32> to vector<8x64xf32>
    %c1 = arith.constant 1 : index
    %c0_5 = arith.constant 0 : index
    %8 = vector.load %arg3[%c1, %c0_5] : memref<3x192xf32, #tpu.memory_space<vmem>>, vector<1x128xf32>
    %c2 = arith.constant 2 : index
    %c0_6 = arith.constant 0 : index
    %9 = vector.load %arg3[%c2, %c0_6] : memref<3x192xf32, #tpu.memory_space<vmem>>, vector<1x128xf32>
    %cst_7 = arith.constant dense<0.000000e+00> : vector<8xf32>
    %10 = vector.multi_reduction <add>, %6, %cst_7 [1] : vector<8x128xf32> to vector<8xf32>
    %11 = vector.shape_cast %10 : vector<8xf32> to vector<8x1xf32>
    %cst_8 = arith.constant 1.280000e+02 : f32
    %12 = vector.broadcast %cst_8 : f32 to vector<8x1xf32>
    %13 = arith.divf %11, %12 : vector<8x1xf32>
    %14 = arith.mulf %6, %6 : vector<8x128xf32>
    %cst_9 = arith.constant dense<0.000000e+00> : vector<8xf32>
    %15 = vector.multi_reduction <add>, %14, %cst_9 [1] : vector<8x128xf32> to vector<8xf32>
    %16 = vector.shape_cast %15 : vector<8xf32> to vector<8x1xf32>
    %cst_10 = arith.constant 1.280000e+02 : f32
    %17 = vector.broadcast %cst_10 : f32 to vector<8x1xf32>
    %18 = arith.divf %16, %17 : vector<8x1xf32>
    %19 = arith.mulf %13, %13 : vector<8x1xf32>
    %20 = arith.subf %18, %19 : vector<8x1xf32>
    %21 = vector.broadcast %13 : vector<8x1xf32> to vector<8x128xf32>
    %22 = arith.subf %6, %21 : vector<8x128xf32>
    %cst_11 = arith.constant 9.99999974E-6 : f32
    %23 = vector.broadcast %cst_11 : f32 to vector<8x1xf32>
    %24 = arith.addf %20, %23 : vector<8x1xf32>
    %25 = math.rsqrt %24 : vector<8x1xf32>
    %26 = vector.broadcast %25 : vector<8x1xf32> to vector<8x128xf32>
    %27 = arith.mulf %22, %26 : vector<8x128xf32>
    %28 = vector.broadcast %8 : vector<1x128xf32> to vector<8x128xf32>
    %29 = arith.mulf %27, %28 : vector<8x128xf32>
    %30 = vector.broadcast %9 : vector<1x128xf32> to vector<8x128xf32>
    %31 = arith.addf %29, %30 : vector<8x128xf32>
    %cst_12 = arith.constant 0.000000e+00 : f32
    %32 = vector.broadcast %cst_12 : f32 to vector<8x128xf32>
    %33 = arith.maximumf %31, %32 : vector<8x128xf32>
    %c0_13 = arith.constant 0 : index
    %c0_14 = arith.constant 0 : index
    %34 = vector.load %arg4[%c0_13, %c0_14] : memref<128x64xf32, #tpu.memory_space<vmem>>, vector<128x64xf32>
    %cst_15 = arith.constant dense<0.000000e+00> : vector<8x64xf32>
    %35 = tpu.matmul %33, %34, %cst_15 {dimension_numbers = #tpu.dot_dimension_numbers<[1], [0], [0], [1], [0, 0, 1, 1], [], []>} : vector<8x128xf32>, vector<128x64xf32>, vector<8x64xf32> -> vector<8x64xf32>
    %c0_16 = arith.constant 0 : index
    %c0_17 = arith.constant 0 : index
    %36 = vector.load %arg5[%c0_16, %c0_17] : memref<5x64xf32, #tpu.memory_space<vmem>>, vector<1x64xf32>
    %37 = vector.broadcast %36 : vector<1x64xf32> to vector<8x64xf32>
    %38 = arith.addf %35, %37 : vector<8x64xf32>
    %c1_18 = arith.constant 1 : index
    %c0_19 = arith.constant 0 : index
    %39 = vector.load %arg5[%c1_18, %c0_19] : memref<5x64xf32, #tpu.memory_space<vmem>>, vector<1x64xf32>
    %c2_20 = arith.constant 2 : index
    %c0_21 = arith.constant 0 : index
    %40 = vector.load %arg5[%c2_20, %c0_21] : memref<5x64xf32, #tpu.memory_space<vmem>>, vector<1x64xf32>
    %cst_22 = arith.constant dense<0.000000e+00> : vector<8xf32>
    %41 = vector.multi_reduction <add>, %38, %cst_22 [1] : vector<8x64xf32> to vector<8xf32>
    %42 = vector.shape_cast %41 : vector<8xf32> to vector<8x1xf32>
    %cst_23 = arith.constant 6.400000e+01 : f32
    %43 = vector.broadcast %cst_23 : f32 to vector<8x1xf32>
    %44 = arith.divf %42, %43 : vector<8x1xf32>
    %45 = arith.mulf %38, %38 : vector<8x64xf32>
    %cst_24 = arith.constant dense<0.000000e+00> : vector<8xf32>
    %46 = vector.multi_reduction <add>, %45, %cst_24 [1] : vector<8x64xf32> to vector<8xf32>
    %47 = vector.shape_cast %46 : vector<8xf32> to vector<8x1xf32>
    %cst_25 = arith.constant 6.400000e+01 : f32
    %48 = vector.broadcast %cst_25 : f32 to vector<8x1xf32>
    %49 = arith.divf %47, %48 : vector<8x1xf32>
    %50 = arith.mulf %44, %44 : vector<8x1xf32>
    %51 = arith.subf %49, %50 : vector<8x1xf32>
    %52 = vector.broadcast %44 : vector<8x1xf32> to vector<8x64xf32>
    %53 = arith.subf %38, %52 : vector<8x64xf32>
    %cst_26 = arith.constant 9.99999974E-6 : f32
    %54 = vector.broadcast %cst_26 : f32 to vector<8x1xf32>
    %55 = arith.addf %51, %54 : vector<8x1xf32>
    %56 = math.rsqrt %55 : vector<8x1xf32>
    %57 = vector.broadcast %56 : vector<8x1xf32> to vector<8x64xf32>
    %58 = arith.mulf %53, %57 : vector<8x64xf32>
    %59 = vector.broadcast %39 : vector<1x64xf32> to vector<8x64xf32>
    %60 = arith.mulf %58, %59 : vector<8x64xf32>
    %61 = vector.broadcast %40 : vector<1x64xf32> to vector<8x64xf32>
    %62 = arith.addf %60, %61 : vector<8x64xf32>
    %cst_27 = arith.constant 0.000000e+00 : f32
    %63 = vector.broadcast %cst_27 : f32 to vector<8x64xf32>
    %64 = arith.maximumf %7, %63 : vector<8x64xf32>
    %65 = arith.addf %62, %64 : vector<8x64xf32>
    %cst_28 = arith.constant 0.000000e+00 : f32
    %66 = vector.broadcast %cst_28 : f32 to vector<8x64xf32>
    %67 = arith.maximumf %65, %66 : vector<8x64xf32>
    %c3 = arith.constant 3 : index
    %c0_29 = arith.constant 0 : index
    %68 = vector.load %arg5[%c3, %c0_29] : memref<5x64xf32, #tpu.memory_space<vmem>>, vector<1x64xf32>
    %69 = vector.broadcast %68 : vector<1x64xf32> to vector<8x64xf32>
    %70 = arith.mulf %67, %69 : vector<8x64xf32>
    %cst_30 = arith.constant dense<0.000000e+00> : vector<8xf32>
    %71 = vector.multi_reduction <add>, %70, %cst_30 [1] : vector<8x64xf32> to vector<8xf32>
    %72 = vector.shape_cast %71 : vector<8xf32> to vector<8x1xf32>
    %c4 = arith.constant 4 : index
    %c0_31 = arith.constant 0 : index
    %73 = vector.load %arg5[%c4, %c0_31] : memref<5x64xf32, #tpu.memory_space<vmem>>, vector<1x1xf32>
    %74 = vector.broadcast %73 : vector<1x1xf32> to vector<8x1xf32>
    %75 = arith.addf %72, %74 : vector<8x1xf32>
    %c0_32 = arith.constant 0 : index
    %c0_33 = arith.constant 0 : index
    %76 = vector.load %arg6[%c0_32, %c0_33] : memref<8x1xf32, #tpu.memory_space<vmem>>, vector<8x1xf32>
    tpu.vector_store %arg6[%c0_32, %c0_33], %75 {strides = array<i32>} : memref<8x1xf32, #tpu.memory_space<vmem>>, vector<8x1xf32>,
    return
  }
  func.func @transform_0(%arg0: i32) -> (i32, i32) {
    %c0_i32 = arith.constant 0 : i32
    %c0_i32_0 = arith.constant 0 : i32
    return %arg0, %c0_i32 : i32, i32
  }
  func.func @transform_1(%arg0: i32) -> (i32, i32) {
    %c0_i32 = arith.constant 0 : i32
    %c0_i32_0 = arith.constant 0 : i32
    %c0_i32_1 = arith.constant 0 : i32
    return %c0_i32, %c0_i32_0 : i32, i32
  }
  func.func @transform_2(%arg0: i32) -> (i32, i32) {
    %c0_i32 = arith.constant 0 : i32
    %c0_i32_0 = arith.constant 0 : i32
    %c0_i32_1 = arith.constant 0 : i32
    return %c0_i32, %c0_i32_0 : i32, i32
  }
  func.func @transform_3(%arg0: i32) -> (i32, i32) {
    %c0_i32 = arith.constant 0 : i32
    %c0_i32_0 = arith.constant 0 : i32
    %c0_i32_1 = arith.constant 0 : i32
    return %c0_i32, %c0_i32_0 : i32, i32
  }
  func.func @transform_4(%arg0: i32) -> (i32, i32) {
    %c0_i32 = arith.constant 0 : i32
    %c0_i32_0 = arith.constant 0 : i32
    %c0_i32_1 = arith.constant 0 : i32
    return %c0_i32, %c0_i32_0 : i32, i32
  }
  func.func @transform_5(%arg0: i32) -> (i32, i32) {
    %c0_i32 = arith.constant 0 : i32
    %c0_i32_0 = arith.constant 0 : i32
    return %arg0, %c0_i32 : i32, i32
  }
}

</mosaic_0001>

<bundles_post_ra>
// kernel: tpu_custom_call.1
= control target key start
LH: loop header
LB: loop body
LE: loop exit
PB: predicated region body
PF: predicated region fallthrough
CT: control target
= control target key end

     0   :  { %vm41_vm0 = vcmask 1041408   ;;  %v358_v3 = vmov 0.0   ;;  %vm37_vm1 = vcmask 80896   ;;  %v27_v6 = vlaneseq  ;;  %s515_s1 = inlined_call_operand.vmem [shape: f32[10,192], index: 1, kind: input, shape index: {}]   ;;  %s516_s0 = inlined_call_operand.vmem [shape: f32[8,10], index: 0, kind: input, shape index: {}]   ;;  %s517_s2 = inlined_call_operand.vmem [shape: f32[3,192], index: 2, kind: input, shape index: {}]   ;;  %s518_s3 = inlined_call_operand.vmem [shape: f32[128,64], index: 3, kind: input, shape index: {}]   ;;  %s519_s4 = inlined_call_operand.vmem [shape: f32[5,64], index: 4, kind: input, shape index: {}]   ;;  %s520_s5 = inlined_call_operand.vmem [shape: f32[8,1], index: 5, kind: output, shape index: {}]  }
   0x1   :  { %v24_v0 = vld [vmem:[%s515_s1 + $0x18] sm:$0x3]  ;;  %v23_v1 = vld [vmem:[%s515_s1 + $0x10] sm:$0x3]  ;;  %v22_v2 = vld [vmem:[%s515_s1 + $0x8] sm:$0xff]  ;;  %112 = vmatprep.mubr.f32.mxu0 %v358_v3  ;;  %317 = vmatprep.subr.mxu1 %v358_v3  ;;  %vm359_vm2 = vmmov 0  }
   0x2   :  { %290 = vmatprep.subr.msk.mxu0 %vm41_vm0, %v24_v0  ;;  %v21_v4 = vld [vmem:[%s515_s1] sm:$0xff]  ;;  %v407_v7 = vshrl.u32 %v27_v6, 7  ;;  %v161_v14 = vld [vmem:[%s518_s3 + $0x78] sm:$0xff]  ;;  %v160_v15 = vld [vmem:[%s518_s3 + $0x70] sm:$0xff]  ;;  %349 = vmatprep.mubr.msk.f32.mxu1 %vm359_vm2, %v358_v3  ;;  %vm239_vm3 = vcmask 523264   ;;  %vm284_vm4 = vcmask 7168  }
   0x3   :  { %291 = vmatpush1.msk.msra.mxu0 %vm41_vm0, %v23_v1  ;;  %v20_v5 = vld [vmem:[%s516_s0] sm:$0xff]  ;;  %318 = vmatpush3.msra.mxu1 %v161_v14  ;;  %v159_v16 = vld [vmem:[%s518_s3 + $0x68] sm:$0xff]  ;;  %v157_v18 = vld [vmem:[%s518_s3 + $0x58] sm:$0xff] }
   0x4   :  { %78 = vmatprep.subr.mxu0 %v22_v2  ;;  %v29_v8 = vsub.s32 0, %v407_v7  ;;  %v413_v9 = vld [vmem:[%s517_s2] ss:$4 sm:$0x3]  ;;  %319 = vmatprep.subr.mxu1 %v358_v3  ;;  %v156_v19 = vld [vmem:[%s518_s3 + $0x50] sm:$0xff]  ;;  %v155_v20 = vld [vmem:[%s518_s3 + $0x48] sm:$0xff] }
   0x5   :  { %79 = vmatpush1.msra.mxu0 %v21_v4  ;;  %320 = vmatpush3.msra.mxu1 %v160_v15  ;;  %v158_v17 = vld [vmem:[%s518_s3 + $0x60] sm:$0xff]  ;;  %v153_v22 = vld [vmem:[%s518_s3 + $0x38] sm:$0xff]  ;;  %v152_v23 = vld [vmem:[%s518_s3 + $0x30] sm:$0xff]  ;;  %v33_v59 = vsub.s32 1, %v407_v7 }
   0x6   :  { %292 = vmatmul.mubr.msk.f32.vlgmr.msra.gmra.mxu0 %vm37_vm1, %v20_v5  ;;  %v30_v10 = vrot.slane %v413_v9, %v29_v8  ;;  %321 = vmatprep.subr.mxu1 %v358_v3  ;;  %v154_v21 = vld [vmem:[%s518_s3 + $0x40] sm:$0xff]  ;;  %v151_v24 = vld [vmem:[%s518_s3 + $0x28] sm:$0xff]  ;;  %v149_v26 = vld [vmem:[%s518_s3 + $0x18] sm:$0xff] }
   0x7   :  { %322 = vmatpush3.msra.mxu1 %v159_v16  ;;  %v150_v25 = vld [vmem:[%s518_s3 + $0x20] sm:$0xff]  ;;  %v148_v27 = vld [vmem:[%s518_s3 + $0x10] sm:$0xff]  ;;  %v147_v28 = vld [vmem:[%s518_s3 + $0x8] sm:$0xff]  ;;  %v34_v60 = vrot.slane %v413_v9, %v33_v59 }
   0x8   :  { %323 = vmatprep.subr.mxu1 %v358_v3  ;;  %v146_v29 = vld [vmem:[%s518_s3] sm:$0xff] }
   0x9   :  { %324 = vmatpush3.msra.mxu1 %v158_v17  ;;  %v293_v39 = vld [vmem:[%s517_s2 + $0x1] ss:$0 sm:$0xff]  ;;  %v294_v41 = vld [vmem:[%s517_s2 + $0x2] ss:$0 sm:$0xff]  ;;  %v295_v45 = vld [vmem:[%s519_s4] ss:$0 sm:$0xff] }
   0xa   :  { %325 = vmatprep.subr.mxu1 %v358_v3  ;;  %v296_v0 = vld [vmem:[%s519_s4 + $0x1] ss:$0 sm:$0xff]  ;;  %v298_v7 = vld [vmem:[%s519_s4 + $0x3] ss:$0 sm:$0xff] }
   0xb   :  { %326 = vmatpush3.msra.mxu1 %v157_v18 }
   0xc   :  { %327 = vmatprep.subr.mxu1 %v358_v3 }
   0xd   :  { %328 = vmatpush3.msra.mxu1 %v156_v19 }
   0xe   :  { %329 = vmatprep.subr.mxu1 %v358_v3 }
   0xf   :  { %330 = vmatpush3.msra.mxu1 %v155_v20 }
  0x10   :  { %331 = vmatprep.subr.mxu1 %v358_v3 }
  0x11   :  { %332 = vmatpush3.msra.mxu1 %v154_v21 }
  0x12   :  { %333 = vmatprep.subr.mxu1 %v358_v3 }
  0x13   :  { %334 = vmatpush3.msra.mxu1 %v153_v22 }
  0x14   :  { %335 = vmatprep.subr.mxu1 %v358_v3 }
  0x15   :  { %336 = vmatpush3.msra.mxu1 %v152_v23 }
  0x16   :  { %337 = vmatprep.subr.mxu1 %v358_v3 }
  0x17   :  { %338 = vmatpush3.msra.mxu1 %v151_v24 }
  0x18   :  { %339 = vmatprep.subr.mxu1 %v358_v3 }
  0x19   :  { %340 = vmatpush3.msra.mxu1 %v150_v25 }
  0x1a   :  { %341 = vmatprep.subr.mxu1 %v358_v3 }
  0x1b   :  { %342 = vmatpush3.msra.mxu1 %v149_v26 }
  0x1c   :  { %343 = vmatprep.subr.mxu1 %v358_v3 }
  0x1d   :  { %344 = vmatpush3.msra.mxu1 %v148_v27 }
  0x1e   :  { %345 = vmatprep.subr.mxu1 %v358_v3 }
  0x1f   :  { %346 = vmatpush3.msra.mxu1 %v147_v28 }
  0x20   :  { %347 = vmatprep.subr.mxu1 %v358_v3  ;;  %v297_v3 = vld [vmem:[%s519_s4 + $0x2] ss:$0 sm:$0xff] }
  0x21   :  { %348 = vmatpush3.msra.mxu1 %v146_v29 }
  0xc6   :  { %v114_v11 = vpop.f32.mrf.mxu0 }
  0xc7   :  { %v416_v12 = vadd.f32 %v114_v11, %v30_v10 }
  0xc8   :  { %v116_v61 = vpop.f32.mrf.mxu0 }
  0xc9   :  { %121 = vadd.xlane.f32.xlu0 %v416_v12  ;;  %v125_v13 = vmul.f32 %v416_v12, %v416_v12  ;;  %v117_v1 = vadd.f32 %v116_v61, %v34_v60 }
  0xcb   :  { %v266_v5 = vmax.f32 %v117_v1, 0.0 }
  0xcd   :  { %126 = vadd.xlane.f32.xlu0 %v125_v13 }
 0x152   :  { %v122_v30 = vpop.xlane.xlu0 %121 }
 0x153   :  { %v124_v31 = vmul.f32 0.0078125, %v122_v30 }
 0x155   :  { %v129_v33 = vmul.f32 %v124_v31, %v124_v31  ;;  %v131_v37 = vsub.f32 %v416_v12, %v124_v31  ;;  %v299_v12 = vld [vmem:[%s519_s4 + $0x4] ss:$0 sm:$0xff] }
 0x156   :  { %v127_v32 = vpop.xlane.xlu0 %126 }
 0x157   :  { %v128_v34 = vmul.f32 0.0078125, %v127_v32 }
 0x159   :  { %v130_v35 = vsub.f32 %v128_v34, %v129_v33 }
 0x15b   :  { %v132_v36 = vadd.f32 1e-05, %v130_v35 }
 0x15d   :  { %354 = vrsqrt.f32 %v132_v36 }
 0x16a   :  { %v355_v38 = vpop.eup %354 }
 0x16b   :  { %v134_v40 = vmul.f32 %v355_v38, %v131_v37 }
 0x16d   :  { %v139_v42 = vmul.f32 %v293_v39, %v134_v40 }
 0x16f   :  { %v144_v43 = vadd.f32 %v294_v41, %v139_v42 }
 0x171   :  { %v145_v44 = vmax.f32 %v144_v43, 0.0 }
 0x173   :  { %350 = vmatmul.mubr.f32.vlgmr.msra.gmra.mxu1 %v145_v44 }
 0x233   :  { %v233_v46 = vpop.f32.mrf.mxu1 }
 0x234   :  { %v234_v47 = vadd.f32 %v295_v45, %v233_v46 }
 0x235   :  { %v351_v48 = vpop.f32.mrf.mxu1 }
 0x236   :  { %v240_v49 = vsel %vm239_vm3, %v234_v47, 0.0  ;;  %v245_v50 = vmul.f32 %v234_v47, %v234_v47 }
 0x237   :  { %241 = vadd.xlane.f32.xlu1 %v240_v49 }
 0x238   :  { %v246_v51 = vsel %vm239_vm3, %v245_v50, 0.0 }
 0x23b   :  { %247 = vadd.xlane.f32.xlu1 %v246_v51 }
 0x2c0   :  { %v242_v52 = vpop.xlane.xlu1 %241 }
 0x2c1   :  { %v244_v53 = vmul.f32 0.015625, %v242_v52 }
 0x2c3   :  { %v250_v55 = vmul.f32 %v244_v53, %v244_v53  ;;  %v252_v62 = vsub.f32 %v234_v47, %v244_v53 }
 0x2c4   :  { %v248_v54 = vpop.xlane.xlu1 %247 }
 0x2c5   :  { %v249_v56 = vmul.f32 0.015625, %v248_v54 }
 0x2c7   :  { %v251_v57 = vsub.f32 %v249_v56, %v250_v55 }
 0x2c9   :  { %v253_v58 = vadd.f32 1e-05, %v251_v57 }
 0x2cb   :  { %356 = vrsqrt.f32 %v253_v58 }
 0x2d8   :  { %v357_v63 = vpop.eup %356 }
 0x2d9   :  { %v255_v2 = vmul.f32 %v357_v63, %v252_v62 }
 0x2db   :  { %v260_v4 = vmul.f32 %v296_v0, %v255_v2 }
 0x2dd   :  { %v265_v6 = vadd.f32 %v297_v3, %v260_v4 }
 0x2df   :  { %v267_v8 = vadd.f32 %v266_v5, %v265_v6 }
 0x2e1   :  { %v268_v9 = vmax.f32 %v267_v8, 0.0 }
 0x2e3   :  { %v274_v10 = vmul.f32 %v298_v7, %v268_v9 }
 0x2e5   :  { %v275_v11 = vsel %vm239_vm3, %v274_v10, 0.0 }
 0x2e6   :  { %276 = vadd.xlane.f32.xlu0 %v275_v11 }
 0x36f   :  { %v277_v13 = vpop.xlane.xlu0 %276 }
 0x370   :  { %v283_v14 = vadd.f32 %v299_v12, %v277_v13 }
 0x372   :  { %285 = vst.msk [vmem:[%s520_s5] sm:$0xff] %vm284_vm4, %v283_v14 }

</bundles_post_ra>
